<compile_context>
chip_gen: v6e
topology: v6e:2x2x1
jax: 0.10.0
libtpu: 0.0.40
codegen_flags: <defaults>
</compile_context>

<pallas_src>
import functools

import jax
import jax.numpy as jnp
from jax import lax
from jax.experimental import pallas as pl
from jax.experimental.pallas import tpu as pltpu


def _round_up(x, m):
    return (x + m - 1) // m * m


def mlp_kernel(x_ref, w_ref, b_ref, o_ref, acc_ref, *, compute_dtype):
    """One (tile_m, tile_n) output tile, accumulated over the K grid axis.

    x_ref:  (tile_m, tile_k)  activation block
    w_ref:  (tile_n, tile_k)  weight block in PyTorch [out, in] layout (no transpose)
    b_ref:  (1, tile_n)       bias block (f32)
    o_ref:  (tile_m, tile_n)  output block
    acc_ref:(tile_m, tile_n)  f32 accumulator scratch, resident across the K axis
    """
    k = pl.program_id(2)

    @pl.when(k == 0)
    def _():
        acc_ref[...] = jnp.zeros_like(acc_ref)

    x = x_ref[...].astype(compute_dtype)
    w = w_ref[...].astype(compute_dtype)
    # y = x @ W.T with W kept [out, in]: contract dim 1 of x with dim 1 of W.
    acc_ref[...] += lax.dot_general(
        x, w,
        dimension_numbers=(((1,), (1,)), ((), ())),
        preferred_element_type=jnp.float32)

    @pl.when(k == pl.num_programs(2) - 1)
    def _():
        y = acc_ref[...] + b_ref[...]                     # bias add in f32 (VPU)
        o_ref[...] = jnp.tanh(y).astype(o_ref.dtype)      # tanh on EUP, fused epilogue


def mlp_layer(features, weight, bias, *, compute_dtype=jnp.bfloat16,
              tile_m=None, tile_n=None, tile_k=None):
    """features: [B, H]; weight: [H, H] in PyTorch (out, in) layout; bias: [H].

    Computes tanh(features @ weight.T + bias) with f32 accumulation.
    """
    B, H = features.shape
    assert weight.shape == (H, H) and bias.shape == (H,)
    out_dtype = features.dtype

    # Lane-dense padding: pad hidden dim to a multiple of 128 so loads/stores are
    # unmasked (no-op for real hidden sizes like 768/1024/4096).
    Hp = _round_up(H, 128)
    if Hp != H:
        features = jnp.pad(features, ((0, 0), (0, Hp - H)))
        weight = jnp.pad(weight, ((0, Hp - H), (0, Hp - H)))
        bias = jnp.pad(bias, (0, Hp - H))

    # bf16 matmul inputs (MXU full rate, half the weight DMA bytes), f32 accumulate.
    # TODO(synk): for real models store the parameters in `compute_dtype` at init so
    # this cast is not an extra HBM pass per call.
    if features.dtype != compute_dtype:
        features = features.astype(compute_dtype)
    if weight.dtype != compute_dtype:
        weight = weight.astype(compute_dtype)
    bias2 = bias.astype(jnp.float32).reshape(1, Hp)

    # Tile sizes: (8, 128)-aligned, big enough to amortize per-step overhead and
    # fill the MXU, small enough that double-buffered tiles + the f32 accumulator
    # fit v7x's 64 MiB VMEM with headroom.
    if tile_m is None:
        tile_m = B if B <= 256 else 256
    if tile_n is None:
        tile_n = Hp if Hp <= 256 else 256
    if tile_k is None:
        tile_k = Hp if Hp <= 512 else 512

    grid = (pl.cdiv(B, tile_m), pl.cdiv(Hp, tile_n), pl.cdiv(Hp, tile_k))

    in_size = jnp.dtype(compute_dtype).itemsize
    out_size = jnp.dtype(out_dtype).itemsize
    vmem_needed = (2 * tile_m * tile_k * in_size        # x (double-buffered)
                   + 2 * tile_n * tile_k * in_size      # w (double-buffered)
                   + 2 * tile_n * 4                     # bias
                   + 2 * tile_m * tile_n * out_size     # out (double-buffered)
                   + tile_m * tile_n * 4)               # f32 accumulator
    vmem_limit = int(min(64 * 1024 * 1024, max(2 * vmem_needed, 8 * 1024 * 1024)))

    cost = pl.CostEstimate(
        flops=2 * B * Hp * Hp,
        transcendentals=B * Hp,
        bytes_accessed=(B * Hp * in_size + Hp * Hp * in_size
                        + Hp * 4 + B * Hp * out_size))

    kernel = functools.partial(mlp_kernel, compute_dtype=compute_dtype)

    out = pl.pallas_call(
        kernel,
        out_shape=jax.ShapeDtypeStruct((B, Hp), out_dtype),
        grid_spec=pltpu.PrefetchScalarGridSpec(
            num_scalar_prefetch=0,
            grid=grid,
            in_specs=[
                pl.BlockSpec((tile_m, tile_k), lambda i, j, k: (i, k)),   # x
                pl.BlockSpec((tile_n, tile_k), lambda i, j, k: (j, k)),   # W [out, in]
                pl.BlockSpec((1, tile_n), lambda i, j, k: (0, j)),        # bias
            ],
            out_specs=pl.BlockSpec((tile_m, tile_n), lambda i, j, k: (i, j)),
            scratch_shapes=[pltpu.VMEM((tile_m, tile_n), jnp.float32)],
        ),
        compiler_params=pltpu.CompilerParams(
            dimension_semantics=("parallel", "parallel", "arbitrary"),
            vmem_limit_bytes=vmem_limit),
        cost_estimate=cost,
    )(features, weight, bias2)

    if Hp != H:
        out = out[:, :H]
    return out


if __name__ == "__main__":
    key = jax.random.PRNGKey(0)
    k_x, k_w, k_b = jax.random.split(key, 3)

    B, H = 2, 32                       # batch of CLS vectors, hidden_size = 32
    features = jax.random.normal(k_x, (B, H), dtype=jnp.float32)
    # Deterministic parameter init (nn.Linear shapes: weight [H, H] = [out, in], bias [H]).
    weight = jax.random.normal(k_w, (H, H), dtype=jnp.float32) * (1.0 / jnp.sqrt(H))
    bias = jax.random.normal(k_b, (H,), dtype=jnp.float32) * 0.01

    # Reference: same math as torch — tanh(x @ W.T + b).
    ref = jnp.tanh(features @ weight.T + bias)

    # f32 compute path: tight correctness check.
    out_f32 = mlp_layer(features, weight, bias, compute_dtype=jnp.float32)
    jax.block_until_ready(out_f32)
    assert out_f32.shape == (B, H)
    assert jnp.allclose(out_f32, ref, atol=1e-5, rtol=1e-5), "f32 path mismatch vs reference"

    # bf16-input / f32-accumulate fast path (production default): loose check.
    out_bf16 = mlp_layer(features, weight, bias)   # compute_dtype=bfloat16
    jax.block_until_ready(out_bf16)
    assert jnp.allclose(out_bf16, ref, atol=5e-2, rtol=5e-2), "bf16 path mismatch vs reference"

    print("KERNEL_OK")
</pallas_src>

<mosaic_0001>
module attributes {stable_mosaic.version = 11 : i64} {
  func.func @mlp_kernel(%arg0: i32, %arg1: i32, %arg2: i32, %arg3: memref<2x128xf32, #tpu.memory_space<vmem>>, %arg4: memref<128x128xf32, #tpu.memory_space<vmem>>, %arg5: memref<1x128xf32, #tpu.memory_space<vmem>>, %arg6: memref<2x128xf32, #tpu.memory_space<vmem>>, %arg7: memref<2x128xf32, #tpu.memory_space<vmem>>) attributes {dimension_semantics = [#tpu.dimension_semantics<parallel>, #tpu.dimension_semantics<parallel>, #tpu.dimension_semantics<arbitrary>], iteration_bounds = array<i64: 1, 1, 1>, scalar_prefetch = 0 : i64, scratch_operands = 1 : i64, tpu.core_type = #tpu.core_type<tc>, window_params = [{transform_indices = @transform_0, window_bounds = array<i64: 2, 128>}, {transform_indices = @transform_1, window_bounds = array<i64: 128, 128>}, {transform_indices = @transform_2, window_bounds = array<i64: 1, 128>}, {transform_indices = @transform_3, window_bounds = array<i64: 2, 128>}]} {
    %c0_i32 = arith.constant 0 : i32
    %0 = arith.cmpi eq, %arg2, %c0_i32 : i32
    %1 = arith.extui %0 : i1 to i32
    %c0_i32_0 = arith.constant 0 : i32
    %2 = arith.cmpi ne, %1, %c0_i32_0 : i32
    scf.if %2 {
      %cst_10 = arith.constant 0.000000e+00 : f32
      %12 = vector.broadcast %cst_10 : f32 to vector<2x128xf32>
      %c0_11 = arith.constant 0 : index
      %c0_12 = arith.constant 0 : index
      %13 = vector.load %arg7[%c0_11, %c0_12] : memref<2x128xf32, #tpu.memory_space<vmem>>, vector<2x128xf32>
      tpu.vector_store %arg7[%c0_11, %c0_12], %12 {strides = array<i32>} : memref<2x128xf32, #tpu.memory_space<vmem>>, vector<2x128xf32>,
    } else {
    }
    %c0 = arith.constant 0 : index
    %c0_1 = arith.constant 0 : index
    %3 = vector.load %arg3[%c0, %c0_1] : memref<2x128xf32, #tpu.memory_space<vmem>>, vector<2x128xf32>
    %c0_2 = arith.constant 0 : index
    %c0_3 = arith.constant 0 : index
    %4 = vector.load %arg4[%c0_2, %c0_3] : memref<128x128xf32, #tpu.memory_space<vmem>>, vector<128x128xf32>
    %c0_4 = arith.constant 0 : index
    %c0_5 = arith.constant 0 : index
    %5 = vector.load %arg7[%c0_4, %c0_5] : memref<2x128xf32, #tpu.memory_space<vmem>>, vector<2x128xf32>
    %cst = arith.constant dense<0.000000e+00> : vector<2x128xf32>
    %6 = tpu.matmul %3, %4, %cst {dimension_numbers = #tpu.dot_dimension_numbers<[1], [1], [0], [0], [0, 0, 1, 0], [], []>} : vector<2x128xf32>, vector<128x128xf32>, vector<2x128xf32> -> vector<2x128xf32>
    %7 = arith.addf %5, %6 : vector<2x128xf32>
    %c0_6 = arith.constant 0 : index
    %c0_7 = arith.constant 0 : index
    %8 = vector.load %arg7[%c0_6, %c0_7] : memref<2x128xf32, #tpu.memory_space<vmem>>, vector<2x128xf32>
    tpu.vector_store %arg7[%c0_6, %c0_7], %7 {strides = array<i32>} : memref<2x128xf32, #tpu.memory_space<vmem>>, vector<2x128xf32>,
    %c0_i32_8 = arith.constant 0 : i32
    %9 = arith.cmpi eq, %arg2, %c0_i32_8 : i32
    %10 = arith.extui %9 : i1 to i32
    %c0_i32_9 = arith.constant 0 : i32
    %11 = arith.cmpi ne, %10, %c0_i32_9 : i32
    scf.if %11 {
      %c0_10 = arith.constant 0 : index
      %c0_11 = arith.constant 0 : index
      %12 = vector.load %arg7[%c0_10, %c0_11] : memref<2x128xf32, #tpu.memory_space<vmem>>, vector<2x128xf32>
      %c0_12 = arith.constant 0 : index
      %c0_13 = arith.constant 0 : index
      %13 = vector.load %arg5[%c0_12, %c0_13] : memref<1x128xf32, #tpu.memory_space<vmem>>, vector<1x128xf32>
      %14 = vector.broadcast %13 : vector<1x128xf32> to vector<2x128xf32>
      %15 = arith.addf %12, %14 : vector<2x128xf32>
      %16 = math.tanh %15 : vector<2x128xf32>
      %c0_14 = arith.constant 0 : index
      %c0_15 = arith.constant 0 : index
      %17 = vector.load %arg6[%c0_14, %c0_15] : memref<2x128xf32, #tpu.memory_space<vmem>>, vector<2x128xf32>
      tpu.vector_store %arg6[%c0_14, %c0_15], %16 {strides = array<i32>} : memref<2x128xf32, #tpu.memory_space<vmem>>, vector<2x128xf32>,
    } else {
    }
    return
  }
  func.func @transform_0(%arg0: i32, %arg1: i32, %arg2: i32) -> (i32, i32) {
    %c0_i32 = arith.constant 0 : i32
    return %arg0, %arg2 : i32, i32
  }
  func.func @transform_1(%arg0: i32, %arg1: i32, %arg2: i32) -> (i32, i32) {
    %c0_i32 = arith.constant 0 : i32
    return %arg1, %arg2 : i32, i32
  }
  func.func @transform_2(%arg0: i32, %arg1: i32, %arg2: i32) -> (i32, i32) {
    %c0_i32 = arith.constant 0 : i32
    %c0_i32_0 = arith.constant 0 : i32
    return %c0_i32, %arg1 : i32, i32
  }
  func.func @transform_3(%arg0: i32, %arg1: i32, %arg2: i32) -> (i32, i32) {
    %c0_i32 = arith.constant 0 : i32
    return %arg0, %arg1 : i32, i32
  }
}

</mosaic_0001>

<bundles_post_ra>
// kernel: tpu_custom_call.1
= control target key start
LH: loop header
LB: loop body
LE: loop exit
PB: predicated region body
PF: predicated region fallthrough
CT: control target
= control target key end

     0   :  { %8 = vsyncpa [#allocation4], 0  ;;  %s333_s0 = inlined_call_operand.hbm [shape: f32[2,128], index: 0, kind: input, shape index: {}]   ;;  %s334_s1 = inlined_call_operand.hbm [shape: f32[128,128], index: 1, kind: input, shape index: {}]   ;;  %s335_s2 = inlined_call_operand.vmem [shape: f32[1,128], index: 2, kind: input, shape index: {}]   ;;  %s336_s3 = inlined_call_operand.hbm [shape: f32[2,128], index: 3, kind: output, shape index: {}]  }
   0x1   :  { %9 = vsyncpa [#allocation7], 0 }
   0x2   :  { %10 = vsyncpa [#allocation5], 0  ;;  %s294_s12 = smov [#allocation3]   ;;  %s295_s14 = smov [#allocation6]  }
   0x3   :  { %s17_s13 = sshll.u32 %s294_s12, 4  ;;  %s26_s15 = sshll.u32 %s295_s14, 4  ;;  %s18_s13 = int_to_ptr.vmem [resolvable:$true] %s17_s13  ;;  %s27_s15 = int_to_ptr.vmem [resolvable:$true] %s26_s15 }
   0x4   :  { %s236_s16 = scalar_lea.vmem %s18_s13, 32  ;;  %p241_p1 = scmp.lt.s32.totalorder %s18_s13, %s18_s13 }
   0x5   :  { %p237_p0 = scmp.ne.s32.totalorder %s18_s13, %s236_s16  ;;  %p242_p2 = scmp.lt.s32.totalorder %s236_s16, %s236_s16 }
   0x7   :  { %p243_p3 = por %p242_p2, %p241_p1 }
   0x9   :  { %p244_p4 = pnand %p243_p3, %p237_p0 }
   0xb   :  { %247 = shalt.err (!%p244_p4)
}
   0xc   :  { %20 = dma.hbm_to_vmem [thread:$0]  %s333_s0, 32, %s18_s13, [#allocation4]  }
   0xd   :  { %s256_s19 = scalar_lea.vmem %s27_s15, 2048  ;;  %p261_p6 = scmp.lt.s32.totalorder %s27_s15, %s27_s15 }
   0xe   :  { %p257_p5 = scmp.ne.s32.totalorder %s27_s15, %s256_s19  ;;  %p262_p7 = scmp.lt.s32.totalorder %s256_s19, %s256_s19 }
  0x10   :  { %p263_p8 = por %p262_p7, %p261_p6 }
  0x12   :  { %p264_p9 = pnand %p263_p8, %p257_p5 }
  0x14   :  { %267 = shalt.err (!%p264_p9)
}
  0x15   :  { %s296_s20 = smov 128   ;;  %s297_s21 = smov 8  }
  0x16   :  { %32 = dma.hbm_to_vmem [thread:$0]  %s334_s1, 2048, %s27_s15, [#allocation7], %s296_s20, %s296_s20, %s297_s21  }
  0x17   :  { %288 = dma.done.wait [#allocation4], 32  }
  0x18   :  { %289 = vsyncadd [#allocation4], 4294967264 }
  0x19   :  { %290 = dma.done.wait [#allocation7], 2048  }
  0x1a   :  { %291 = vsyncadd [#allocation7], 4294965248  ;;  %v298_v0 = vmov 0.0   ;;  %vm299_vm0 = vmmov 0   ;;  %v62_v1 = vld [vmem:[#allocation6 + $0x78] sm:$0xff]  ;;  %v61_v2 = vld [vmem:[#allocation6 + $0x70] sm:$0xff] }
  0x1b   :  { %184 = vmatprep.subr.mxu0 %v298_v0  ;;  %45 = vst [vmem:[#allocation2] sm:$0x3] %v298_v0  ;;  %216 = vmatprep.mubr.msk.f32.mxu0 %vm299_vm0, %v298_v0  ;;  %v60_v3 = vld [vmem:[#allocation6 + $0x68] sm:$0xff]  ;;  %v59_v4 = vld [vmem:[#allocation6 + $0x60] sm:$0xff]  ;;  %v58_v5 = vld [vmem:[#allocation6 + $0x58] sm:$0xff]  ;;  %s300_s24 = smov [#allocation8]  }
  0x1c   :  { %185 = vmatpush3.xpose.msra.mxu0 %v62_v1  ;;  %v57_v6 = vld [vmem:[#allocation6 + $0x50] sm:$0xff]  ;;  %v56_v7 = vld [vmem:[#allocation6 + $0x48] sm:$0xff]  ;;  %v55_v8 = vld [vmem:[#allocation6 + $0x40] sm:$0xff]  ;;  %s156_s25 = sshll.u32 %s300_s24, 4  ;;  %s157_s25 = int_to_ptr.vmem [resolvable:$true] %s156_s25 }
  0x1d   :  { %186 = vmatprep.subr.mxu0 %v298_v0  ;;  %v54_v9 = vld [vmem:[#allocation6 + $0x38] sm:$0xff]  ;;  %v53_v10 = vld [vmem:[#allocation6 + $0x30] sm:$0xff]  ;;  %v52_v11 = vld [vmem:[#allocation6 + $0x28] sm:$0xff]  ;;  %s268_s26 = scalar_lea.vmem %s157_s25, 32  ;;  %p273_p11 = scmp.lt.s32.totalorder %s157_s25, %s157_s25 }
  0x1e   :  { %v51_v12 = vld [vmem:[#allocation6 + $0x20] sm:$0xff]  ;;  %v50_v13 = vld [vmem:[#allocation6 + $0x18] sm:$0xff]  ;;  %v49_v14 = vld [vmem:[#allocation6 + $0x10] sm:$0xff]  ;;  %p269_p10 = scmp.ne.s32.totalorder %s157_s25, %s268_s26  ;;  %p274_p12 = scmp.lt.s32.totalorder %s268_s26, %s268_s26 }
  0x1f   :  { %v48_v15 = vld [vmem:[#allocation6 + $0x8] sm:$0xff]  ;;  %v47_v16 = vld [vmem:[#allocation6] sm:$0xff]  ;;  %v46_v17 = vld [vmem:[#allocation3] sm:$0x3] }
  0x20   :  { %187 = vmatpush3.xpose.msra.mxu0 %v61_v2  ;;  %v166_v22 = vld [vmem:[%s335_s2] ss:$0 sm:$0xff]  ;;  %p275_p13 = por %p274_p12, %p273_p11 }
  0x21   :  { %188 = vmatprep.subr.mxu0 %v298_v0 }
  0x22   :  { %v63_v18 = vld [vmem:[#allocation2] sm:$0x3]  ;;  %p276_p0 = pnand %p275_p13, %p269_p10 }
  0x24   :  { %189 = vmatpush3.xpose.msra.mxu0 %v60_v3 }
  0x25   :  { %190 = vmatprep.subr.mxu0 %v298_v0 }
  0x28   :  { %191 = vmatpush3.xpose.msra.mxu0 %v59_v4 }
  0x29   :  { %192 = vmatprep.subr.mxu0 %v298_v0 }
  0x2c   :  { %193 = vmatpush3.xpose.msra.mxu0 %v58_v5 }
  0x2d   :  { %194 = vmatprep.subr.mxu0 %v298_v0 }
  0x30   :  { %195 = vmatpush3.xpose.msra.mxu0 %v57_v6 }
  0x31   :  { %196 = vmatprep.subr.mxu0 %v298_v0 }
  0x34   :  { %197 = vmatpush3.xpose.msra.mxu0 %v56_v7 }
  0x35   :  { %198 = vmatprep.subr.mxu0 %v298_v0 }
  0x38   :  { %199 = vmatpush3.xpose.msra.mxu0 %v55_v8 }
  0x39   :  { %200 = vmatprep.subr.mxu0 %v298_v0 }
  0x3c   :  { %201 = vmatpush3.xpose.msra.mxu0 %v54_v9 }
  0x3d   :  { %202 = vmatprep.subr.mxu0 %v298_v0 }
  0x40   :  { %203 = vmatpush3.xpose.msra.mxu0 %v53_v10 }
  0x41   :  { %204 = vmatprep.subr.mxu0 %v298_v0 }
  0x44   :  { %205 = vmatpush3.xpose.msra.mxu0 %v52_v11 }
  0x45   :  { %206 = vmatprep.subr.mxu0 %v298_v0 }
  0x48   :  { %207 = vmatpush3.xpose.msra.mxu0 %v51_v12 }
  0x49   :  { %208 = vmatprep.subr.mxu0 %v298_v0 }
  0x4c   :  { %209 = vmatpush3.xpose.msra.mxu0 %v50_v13 }
  0x4d   :  { %210 = vmatprep.subr.mxu0 %v298_v0 }
  0x50   :  { %211 = vmatpush3.xpose.msra.mxu0 %v49_v14 }
  0x51   :  { %212 = vmatprep.subr.mxu0 %v298_v0 }
  0x54   :  { %213 = vmatpush3.xpose.msra.mxu0 %v48_v15 }
  0x55   :  { %214 = vmatprep.subr.mxu0 %v298_v0 }
  0x58   :  { %215 = vmatpush3.xpose.msra.mxu0 %v47_v16 }
  0x5b   :  { %217 = vmatmul.mubr.f32.vlgmr.msra.gmra.mxu0 %v46_v17 }
 0x11b   :  { %v130_v19 = vpop.f32.mrf.mxu0 }
 0x11c   :  { %v134_v20 = vadd.f32 %v130_v19, %v63_v18 }
 0x11d   :  { %v218_v21 = vpop.f32.mrf.mxu0 }
 0x11e   :  { %135 = vst [vmem:[#allocation2] sm:$0x3] %v134_v20 }
 0x125   :  { %v139_v23 = vld [vmem:[#allocation2] sm:$0x3] }
 0x126   :  { %v147_v24 = vadd.f32 %v166_v22, %v139_v23 }
 0x128   :  { %226 = vtanh.f32 %v147_v24 }
 0x135   :  { %v227_v25 = vpop.eup %226 }
 0x136   :  { %149 = vst [vmem:[#allocation8] sm:$0x3] %v227_v25 }
 0x137   :  { %279 = shalt.err (!%p276_p0)
}
 0x138   :  { %159 = dma.vmem_to_hbm [thread:$0]  %s157_s25, 32, %s336_s3, [#allocation5]  }
 0x139   :  { %292 = dma.done.wait [#allocation5], 32  }
 0x13a   :  { %293 = vsyncadd [#allocation5], 4294967264 }
 0x13b   :  { %163 = vsyncpa [#allocation4], 1 }
 0x13c   :  { %164 = vsyncpa [#allocation7], 1 }
 0x13d   :  { %165 = vsyncpa [#allocation5], 1 }

</bundles_post_ra>
